<compile_context>
chip_gen: v5e
topology: v5e:2x2
jax: 0.10.0
libtpu: 0.0.40
codegen_flags: <defaults>
</compile_context>

<pallas_src>
import functools

import jax
import jax.numpy as jnp
from jax.experimental import pallas as pl
from jax.experimental.pallas import tpu as pltpu

LANE = 128


def _round_up(n, m):
    return ((n + m - 1) // m) * m


def _make_fused_mlp_kernel(num_layers):
    """Build a fused kernel for a fixed (static) number of Linear layers."""

    def kernel(*refs):
        # refs = (x_ref, w0, c0, w1, c1, ..., w_last, b_last, o_ref)
        x_ref = refs[0]
        o_ref = refs[-1]
        h = x_ref[...].astype(jnp.float32)
        idx = 1
        # hidden layers: relu(x @ W' + c)  (BN already folded into W', c)
        for _ in range(num_layers - 1):
            w = refs[idx][...]
            c = refs[idx + 1][...]
            idx += 2
            h = jnp.maximum(
                jnp.dot(h, w, preferred_element_type=jnp.float32) + c, 0.0
            )
            # dropout: identity (eval mode)
        # final linear (no BN / activation)
        w = refs[idx][...]
        b = refs[idx + 1][...]
        o_ref[...] = (
            jnp.dot(h, w, preferred_element_type=jnp.float32) + b
        ).astype(o_ref.dtype)

    return kernel


def fused_mlp(x_pad, layer_params, *, tm=128):
    """Run the whole MLP in one pallas_call.

    x_pad:        (N, F_pad) with F_pad % 128 == 0
    layer_params: list of (W_pad, c_pad) with all dims padded to 128 multiples
    """
    N, F_pad = x_pad.shape
    num_layers = len(layer_params)
    out_pad = layer_params[-1][0].shape[1]
    tm = min(tm, N)
    grid = (pl.cdiv(N, tm),)

    in_specs = [pl.BlockSpec((tm, F_pad), lambda i: (i, 0))]
    flat_params = []
    for w, c in layer_params:
        in_specs.append(pl.BlockSpec(w.shape, lambda i: (0, 0)))
        in_specs.append(pl.BlockSpec(c.shape, lambda i: (0, 0)))
        flat_params.extend([w, c])

    return pl.pallas_call(
        _make_fused_mlp_kernel(num_layers),
        out_shape=jax.ShapeDtypeStruct((N, out_pad), x_pad.dtype),
        grid_spec=pl.GridSpec(
            grid=grid,
            in_specs=in_specs,
            out_specs=pl.BlockSpec((tm, out_pad), lambda i: (i, 0)),
        ),
        compiler_params=pltpu.CompilerParams(
            dimension_semantics=("parallel",),
        ),
    )(x_pad, *flat_params)


def init_params(key, num_features, hidden_channels, out_channels, num_layers):
    """Deterministic parameter init mirroring the module's __init__ shapes."""
    dims = [num_features] + [hidden_channels] * (num_layers - 1) + [out_channels]
    params = {"lins": [], "bns": []}
    for li in range(num_layers):
        fan_in, fan_out = dims[li], dims[li + 1]
        key, kw, kb = jax.random.split(key, 3)
        bound = 1.0 / jnp.sqrt(fan_in)
        # PyTorch Linear weight is (out, in); store transposed (in, out).
        w = jax.random.uniform(kw, (fan_in, fan_out), jnp.float32, -bound, bound)
        b = jax.random.uniform(kb, (1, fan_out), jnp.float32, -bound, bound)
        params["lins"].append((w, b))
    for _ in range(num_layers - 1):
        key, kg, kbt, km, kv = jax.random.split(key, 5)
        gamma = 1.0 + 0.1 * jax.random.normal(kg, (1, hidden_channels), jnp.float32)
        beta = 0.1 * jax.random.normal(kbt, (1, hidden_channels), jnp.float32)
        rmean = 0.1 * jax.random.normal(km, (1, hidden_channels), jnp.float32)
        rvar = 1.0 + 0.1 * jax.random.uniform(kv, (1, hidden_channels), jnp.float32)
        eps = 1e-5
        scale = gamma / jnp.sqrt(rvar + eps)
        shift = beta - rmean * scale
        params["bns"].append((scale, shift))
    return params


def prepare_fused_params(params):
    """Fold eval-mode BN into each hidden Linear and pad all dims to 128."""
    lins = params["lins"]
    bns = params["bns"]
    num_layers = len(lins)
    fused = []
    for li in range(num_layers):
        w, b = lins[li]
        if li < num_layers - 1:
            scale, shift = bns[li]
            w = w * scale            # (in, out) * (1, out)
            b = b * scale + shift    # folded bias
        fin, fout = w.shape
        fin_p = _round_up(fin, LANE)
        fout_p = _round_up(fout, LANE)
        w_p = jnp.zeros((fin_p, fout_p), w.dtype).at[:fin, :fout].set(w)
        c_p = jnp.zeros((1, fout_p), b.dtype).at[:, :fout].set(b)
        fused.append((w_p, c_p))
    return fused


@functools.partial(jax.jit, static_argnames=("out_channels", "tm"))
def ke_mlp_forward(x, fused_params, *, out_channels, tm=128):
    """MLP base forward: [Linear -> BN -> ReLU -> dropout(eval)] * (L-1), Linear."""
    N, F = x.shape
    f_pad = fused_params[0][0].shape[0]
    x_pad = jnp.zeros((N, f_pad), x.dtype).at[:, :F].set(x)
    z_pad = fused_mlp(x_pad, fused_params, tm=tm)
    # TODO(synk): KENN knowledge-enhancement layers not translated (no clean
    # Pallas equivalent without the knowledge file); z is the base-NN output.
    return z_pad[:, :out_channels]


if __name__ == "__main__":
    key = jax.random.PRNGKey(0)
    num_nodes = 128        # mini-batch of sampled graph nodes
    num_features = 32
    hidden_channels = 64
    out_channels = 8
    num_layers = 3

    kx, kp = jax.random.split(key)
    x = jax.random.normal(kx, (num_nodes, num_features), jnp.float32)
    params = init_params(kp, num_features, hidden_channels, out_channels, num_layers)
    fused_params = prepare_fused_params(params)

    z = ke_mlp_forward(x, fused_params, out_channels=out_channels, tm=128)
    jax.block_until_ready(z)

    # lightweight correctness check against pure-JAX reference (unfused, unpadded)
    h_ref = x
    for li in range(num_layers - 1):
        w, b = params["lins"][li]
        scale, shift = params["bns"][li]
        h_ref = jnp.maximum((h_ref @ w + b) * scale + shift, 0.0)
    w, b = params["lins"][-1]
    z_ref = h_ref @ w + b
    assert z.shape == (num_nodes, out_channels)
    assert jnp.allclose(z, z_ref, atol=1e-4, rtol=1e-4)

    print("KERNEL_OK")
</pallas_src>

<mosaic_0001>
module attributes {stable_mosaic.version = 11 : i64} {
  func.func @kernel(%arg0: i32, %arg1: memref<128x128xf32, #tpu.memory_space<vmem>>, %arg2: memref<128x128xf32, #tpu.memory_space<vmem>>, %arg3: memref<1x128xf32, #tpu.memory_space<vmem>>, %arg4: memref<128x128xf32, #tpu.memory_space<vmem>>, %arg5: memref<1x128xf32, #tpu.memory_space<vmem>>, %arg6: memref<128x128xf32, #tpu.memory_space<vmem>>, %arg7: memref<1x128xf32, #tpu.memory_space<vmem>>, %arg8: memref<128x128xf32, #tpu.memory_space<vmem>>) attributes {dimension_semantics = [#tpu.dimension_semantics<parallel>], iteration_bounds = array<i64: 1>, scalar_prefetch = 0 : i64, scratch_operands = 0 : i64, tpu.core_type = #tpu.core_type<tc>, window_params = [{transform_indices = @transform_0, window_bounds = array<i64: 128, 128>}, {pipeline_mode = #tpu.pipeline_mode<synchronous>, transform_indices = @transform_1, window_bounds = array<i64: 128, 128>}, {pipeline_mode = #tpu.pipeline_mode<synchronous>, transform_indices = @transform_2, window_bounds = array<i64: 1, 128>}, {pipeline_mode = #tpu.pipeline_mode<synchronous>, transform_indices = @transform_3, window_bounds = array<i64: 128, 128>}, {pipeline_mode = #tpu.pipeline_mode<synchronous>, transform_indices = @transform_4, window_bounds = array<i64: 1, 128>}, {pipeline_mode = #tpu.pipeline_mode<synchronous>, transform_indices = @transform_5, window_bounds = array<i64: 128, 128>}, {pipeline_mode = #tpu.pipeline_mode<synchronous>, transform_indices = @transform_6, window_bounds = array<i64: 1, 128>}, {transform_indices = @transform_7, window_bounds = array<i64: 128, 128>}]} {
    %c0 = arith.constant 0 : index
    %c0_0 = arith.constant 0 : index
    %0 = vector.load %arg1[%c0, %c0_0] : memref<128x128xf32, #tpu.memory_space<vmem>>, vector<128x128xf32>
    %c0_1 = arith.constant 0 : index
    %c0_2 = arith.constant 0 : index
    %1 = vector.load %arg2[%c0_1, %c0_2] : memref<128x128xf32, #tpu.memory_space<vmem>>, vector<128x128xf32>
    %c0_3 = arith.constant 0 : index
    %c0_4 = arith.constant 0 : index
    %2 = vector.load %arg3[%c0_3, %c0_4] : memref<1x128xf32, #tpu.memory_space<vmem>>, vector<1x128xf32>
    %cst = arith.constant dense<0.000000e+00> : vector<128x128xf32>
    %3 = tpu.matmul %0, %1, %cst {dimension_numbers = #tpu.dot_dimension_numbers<[1], [0], [0], [1], [0, 0, 1, 1], [], []>} : vector<128x128xf32>, vector<128x128xf32>, vector<128x128xf32> -> vector<128x128xf32>
    %4 = vector.broadcast %2 : vector<1x128xf32> to vector<128x128xf32>
    %5 = arith.addf %3, %4 : vector<128x128xf32>
    %cst_5 = arith.constant 0.000000e+00 : f32
    %6 = vector.broadcast %cst_5 : f32 to vector<128x128xf32>
    %7 = arith.maximumf %5, %6 : vector<128x128xf32>
    %c0_6 = arith.constant 0 : index
    %c0_7 = arith.constant 0 : index
    %8 = vector.load %arg4[%c0_6, %c0_7] : memref<128x128xf32, #tpu.memory_space<vmem>>, vector<128x128xf32>
    %c0_8 = arith.constant 0 : index
    %c0_9 = arith.constant 0 : index
    %9 = vector.load %arg5[%c0_8, %c0_9] : memref<1x128xf32, #tpu.memory_space<vmem>>, vector<1x128xf32>
    %cst_10 = arith.constant dense<0.000000e+00> : vector<128x128xf32>
    %10 = tpu.matmul %7, %8, %cst_10 {dimension_numbers = #tpu.dot_dimension_numbers<[1], [0], [0], [1], [0, 0, 1, 1], [], []>} : vector<128x128xf32>, vector<128x128xf32>, vector<128x128xf32> -> vector<128x128xf32>
    %11 = vector.broadcast %9 : vector<1x128xf32> to vector<128x128xf32>
    %12 = arith.addf %10, %11 : vector<128x128xf32>
    %cst_11 = arith.constant 0.000000e+00 : f32
    %13 = vector.broadcast %cst_11 : f32 to vector<128x128xf32>
    %14 = arith.maximumf %12, %13 : vector<128x128xf32>
    %c0_12 = arith.constant 0 : index
    %c0_13 = arith.constant 0 : index
    %15 = vector.load %arg6[%c0_12, %c0_13] : memref<128x128xf32, #tpu.memory_space<vmem>>, vector<128x128xf32>
    %c0_14 = arith.constant 0 : index
    %c0_15 = arith.constant 0 : index
    %16 = vector.load %arg7[%c0_14, %c0_15] : memref<1x128xf32, #tpu.memory_space<vmem>>, vector<1x128xf32>
    %cst_16 = arith.constant dense<0.000000e+00> : vector<128x128xf32>
    %17 = tpu.matmul %14, %15, %cst_16 {dimension_numbers = #tpu.dot_dimension_numbers<[1], [0], [0], [1], [0, 0, 1, 1], [], []>} : vector<128x128xf32>, vector<128x128xf32>, vector<128x128xf32> -> vector<128x128xf32>
    %18 = vector.broadcast %16 : vector<1x128xf32> to vector<128x128xf32>
    %19 = arith.addf %17, %18 : vector<128x128xf32>
    %c0_17 = arith.constant 0 : index
    %c0_18 = arith.constant 0 : index
    %20 = vector.load %arg8[%c0_17, %c0_18] : memref<128x128xf32, #tpu.memory_space<vmem>>, vector<128x128xf32>
    tpu.vector_store %arg8[%c0_17, %c0_18], %19 {strides = array<i32>} : memref<128x128xf32, #tpu.memory_space<vmem>>, vector<128x128xf32>,
    return
  }
  func.func @transform_0(%arg0: i32) -> (i32, i32) {
    %c0_i32 = arith.constant 0 : i32
    %c0_i32_0 = arith.constant 0 : i32
    return %arg0, %c0_i32 : i32, i32
  }
  func.func @transform_1(%arg0: i32) -> (i32, i32) {
    %c0_i32 = arith.constant 0 : i32
    %c0_i32_0 = arith.constant 0 : i32
    %c0_i32_1 = arith.constant 0 : i32
    return %c0_i32, %c0_i32_0 : i32, i32
  }
  func.func @transform_2(%arg0: i32) -> (i32, i32) {
    %c0_i32 = arith.constant 0 : i32
    %c0_i32_0 = arith.constant 0 : i32
    %c0_i32_1 = arith.constant 0 : i32
    return %c0_i32, %c0_i32_0 : i32, i32
  }
  func.func @transform_3(%arg0: i32) -> (i32, i32) {
    %c0_i32 = arith.constant 0 : i32
    %c0_i32_0 = arith.constant 0 : i32
    %c0_i32_1 = arith.constant 0 : i32
    return %c0_i32, %c0_i32_0 : i32, i32
  }
  func.func @transform_4(%arg0: i32) -> (i32, i32) {
    %c0_i32 = arith.constant 0 : i32
    %c0_i32_0 = arith.constant 0 : i32
    %c0_i32_1 = arith.constant 0 : i32
    return %c0_i32, %c0_i32_0 : i32, i32
  }
  func.func @transform_5(%arg0: i32) -> (i32, i32) {
    %c0_i32 = arith.constant 0 : i32
    %c0_i32_0 = arith.constant 0 : i32
    %c0_i32_1 = arith.constant 0 : i32
    return %c0_i32, %c0_i32_0 : i32, i32
  }
  func.func @transform_6(%arg0: i32) -> (i32, i32) {
    %c0_i32 = arith.constant 0 : i32
    %c0_i32_0 = arith.constant 0 : i32
    %c0_i32_1 = arith.constant 0 : i32
    return %c0_i32, %c0_i32_0 : i32, i32
  }
  func.func @transform_7(%arg0: i32) -> (i32, i32) {
    %c0_i32 = arith.constant 0 : i32
    %c0_i32_0 = arith.constant 0 : i32
    return %arg0, %c0_i32 : i32, i32
  }
}

</mosaic_0001>

<bundles_post_ra>
// kernel: ke_mlp_forward.1
= control target key start
LH: loop header
LB: loop body
LE: loop exit
PB: predicated region body
PF: predicated region fallthrough
CT: control target
= control target key end

     0   :  { %s707_s1 = inlined_call_operand.vmem [shape: f32[128,128], index: 1, kind: input, shape index: {}]   ;;  %s708_s2 = inlined_call_operand.vmem [shape: f32[1,128], index: 2, kind: input, shape index: {}]   ;;  %s709_s0 = inlined_call_operand.vmem [shape: f32[128,128], index: 0, kind: input, shape index: {}]   ;;  %s710_s3 = inlined_call_operand.vmem [shape: f32[128,128], index: 3, kind: input, shape index: {}]   ;;  %s711_s4 = inlined_call_operand.vmem [shape: f32[1,128], index: 4, kind: input, shape index: {}]   ;;  %s712_s5 = inlined_call_operand.vmem [shape: f32[128,128], index: 5, kind: input, shape index: {}]   ;;  %s713_s6 = inlined_call_operand.vmem [shape: f32[1,128], index: 6, kind: input, shape index: {}]   ;;  %s714_s7 = inlined_call_operand.vmem [shape: f32[128,128], index: 7, kind: output, shape index: {}]  }
   0x1   :  { %v57_v0 = vld [vmem:[%s707_s1 + $0x78] sm:$0xff]  ;;  %v56_v1 = vld [vmem:[%s707_s1 + $0x70] sm:$0xff]  ;;  %v55_v2 = vld [vmem:[%s707_s1 + $0x68] sm:$0xff] }
   0x2   :  { %62 = vmatpush.msra.mxu0 %v57_v0  ;;  %349 = vmatpush.msra.mxu3 %v57_v0  ;;  %v54_v3 = vld [vmem:[%s707_s1 + $0x60] sm:$0xff]  ;;  %v53_v4 = vld [vmem:[%s707_s1 + $0x58] sm:$0xff]  ;;  %v52_v5 = vld [vmem:[%s707_s1 + $0x50] sm:$0xff] }
   0x3   :  { %v51_v6 = vld [vmem:[%s707_s1 + $0x48] sm:$0xff]  ;;  %v50_v7 = vld [vmem:[%s707_s1 + $0x40] sm:$0xff]  ;;  %v49_v8 = vld [vmem:[%s707_s1 + $0x38] sm:$0xff] }
   0x4   :  { %63 = vmatpush.msra.mxu0 %v56_v1  ;;  %350 = vmatpush.msra.mxu3 %v56_v1  ;;  %v48_v9 = vld [vmem:[%s707_s1 + $0x30] sm:$0xff]  ;;  %v47_v10 = vld [vmem:[%s707_s1 + $0x28] sm:$0xff]  ;;  %v46_v11 = vld [vmem:[%s707_s1 + $0x20] sm:$0xff] }
   0x5   :  { %v45_v12 = vld [vmem:[%s707_s1 + $0x18] sm:$0xff]  ;;  %v44_v13 = vld [vmem:[%s707_s1 + $0x10] sm:$0xff]  ;;  %v43_v14 = vld [vmem:[%s707_s1 + $0x8] sm:$0xff] }
   0x6   :  { %64 = vmatpush.msra.mxu0 %v55_v2  ;;  %351 = vmatpush.msra.mxu3 %v55_v2  ;;  %v42_v15 = vld [vmem:[%s707_s1] sm:$0xff]  ;;  %v27_v17 = vld [vmem:[%s709_s0 + $0x8] sm:$0xff]  ;;  %v28_v18 = vld [vmem:[%s709_s0 + $0x10] sm:$0xff] }
   0x7   :  { %v26_v16 = vld [vmem:[%s709_s0] sm:$0xff]  ;;  %v29_v20 = vld [vmem:[%s709_s0 + $0x18] sm:$0xff]  ;;  %v39_v21 = vld [vmem:[%s709_s0 + $0x68] sm:$0xff] }
   0x8   :  { %65 = vmatpush.msra.mxu0 %v54_v3  ;;  %352 = vmatpush.msra.mxu3 %v54_v3  ;;  %v38_v19 = vld [vmem:[%s709_s0 + $0x60] sm:$0xff]  ;;  %v40_v23 = vld [vmem:[%s709_s0 + $0x70] sm:$0xff]  ;;  %v31_v24 = vld [vmem:[%s709_s0 + $0x28] sm:$0xff] }
   0x9   :  { %v30_v22 = vld [vmem:[%s709_s0 + $0x20] sm:$0xff]  ;;  %v41_v25 = vld [vmem:[%s709_s0 + $0x78] sm:$0xff]  ;;  %v32_v26 = vld [vmem:[%s709_s0 + $0x30] sm:$0xff] }
   0xa   :  { %66 = vmatpush.msra.mxu0 %v53_v4  ;;  %353 = vmatpush.msra.mxu3 %v53_v4  ;;  %v33_v27 = vld [vmem:[%s709_s0 + $0x38] sm:$0xff]  ;;  %v157_v29 = vld [vmem:[%s710_s3 + $0x70] sm:$0xff]  ;;  %v156_v30 = vld [vmem:[%s710_s3 + $0x68] sm:$0xff] }
   0xb   :  { %v158_v28 = vld [vmem:[%s710_s3 + $0x78] sm:$0xff]  ;;  %v155_v31 = vld [vmem:[%s710_s3 + $0x60] sm:$0xff]  ;;  %v153_v34 = vld [vmem:[%s710_s3 + $0x50] sm:$0xff] }
   0xc   :  { %67 = vmatpush.msra.mxu0 %v52_v5  ;;  %354 = vmatpush.msra.mxu3 %v52_v5  ;;  %v34_v32 = vld [vmem:[%s709_s0 + $0x40] sm:$0xff]  ;;  %v154_v33 = vld [vmem:[%s710_s3 + $0x58] sm:$0xff]  ;;  %v152_v35 = vld [vmem:[%s710_s3 + $0x48] sm:$0xff] }
   0xd   :  { %163 = vmatpush.msra.mxu1 %v158_v28  ;;  %v151_v36 = vld [vmem:[%s710_s3 + $0x40] sm:$0xff]  ;;  %v35_v37 = vld [vmem:[%s709_s0 + $0x48] sm:$0xff]  ;;  %v150_v38 = vld [vmem:[%s710_s3 + $0x38] sm:$0xff] }
   0xe   :  { %68 = vmatpush.msra.mxu0 %v51_v6  ;;  %355 = vmatpush.msra.mxu3 %v51_v6  ;;  %v149_v39 = vld [vmem:[%s710_s3 + $0x30] sm:$0xff]  ;;  %v148_v40 = vld [vmem:[%s710_s3 + $0x28] sm:$0xff]  ;;  %v147_v41 = vld [vmem:[%s710_s3 + $0x20] sm:$0xff] }
   0xf   :  { %164 = vmatpush.msra.mxu1 %v157_v29  ;;  %v36_v42 = vld [vmem:[%s709_s0 + $0x50] sm:$0xff]  ;;  %v146_v43 = vld [vmem:[%s710_s3 + $0x18] sm:$0xff]  ;;  %v144_v46 = vld [vmem:[%s710_s3 + $0x8] sm:$0xff] }
  0x10   :  { %69 = vmatpush.msra.mxu0 %v50_v7  ;;  %356 = vmatpush.msra.mxu3 %v50_v7  ;;  %v37_v44 = vld [vmem:[%s709_s0 + $0x58] sm:$0xff]  ;;  %v145_v45 = vld [vmem:[%s710_s3 + $0x10] sm:$0xff]  ;;  %v143_v47 = vld [vmem:[%s710_s3] sm:$0xff] }
  0x11   :  { %165 = vmatpush.msra.mxu1 %v156_v30  ;;  %v587_v48 = vld [vmem:[%s708_s2] ss:$0 sm:$0xff] }
  0x12   :  { %70 = vmatpush.msra.mxu0 %v49_v8  ;;  %357 = vmatpush.msra.mxu3 %v49_v8 }
  0x13   :  { %166 = vmatpush.msra.mxu1 %v155_v31 }
  0x14   :  { %71 = vmatpush.msra.mxu0 %v48_v9  ;;  %358 = vmatpush.msra.mxu3 %v48_v9 }
  0x15   :  { %167 = vmatpush.msra.mxu1 %v154_v33 }
  0x16   :  { %72 = vmatpush.msra.mxu0 %v47_v10  ;;  %359 = vmatpush.msra.mxu3 %v47_v10 }
  0x17   :  { %168 = vmatpush.msra.mxu1 %v153_v34 }
  0x18   :  { %73 = vmatpush.msra.mxu0 %v46_v11  ;;  %360 = vmatpush.msra.mxu3 %v46_v11 }
  0x19   :  { %169 = vmatpush.msra.mxu1 %v152_v35 }
  0x1a   :  { %74 = vmatpush.msra.mxu0 %v45_v12  ;;  %361 = vmatpush.msra.mxu3 %v45_v12 }
  0x1b   :  { %170 = vmatpush.msra.mxu1 %v151_v36 }
  0x1c   :  { %75 = vmatpush.msra.mxu0 %v44_v13  ;;  %362 = vmatpush.msra.mxu3 %v44_v13 }
  0x1d   :  { %171 = vmatpush.msra.mxu1 %v150_v38 }
  0x1e   :  { %76 = vmatpush.msra.mxu0 %v43_v14  ;;  %363 = vmatpush.msra.mxu3 %v43_v14 }
  0x1f   :  { %172 = vmatpush.msra.mxu1 %v149_v39 }
  0x20   :  { %77 = vmatpush.msra.mxu0 %v42_v15  ;;  %364 = vmatpush.msra.mxu3 %v42_v15 }
  0x21   :  { %78 = vmatmul.f32.vlgmr.msra.gmra.mxu0 %v26_v16  ;;  %114 = vmatmul.f32.vlgmr.msra.gmra.mxu3 %v38_v19 }
  0x22   :  { %365 = vmatpush.msrb.mxu3 %v158_v28  ;;  %173 = vmatpush.msra.mxu1 %v148_v40  ;;  %v255_v28 = vld [vmem:[%s712_s5 + $0x58] sm:$0xff] }
  0x24   :  { %366 = vmatpush.msrb.mxu3 %v157_v29  ;;  %174 = vmatpush.msra.mxu1 %v147_v41  ;;  %v254_v29 = vld [vmem:[%s712_s5 + $0x50] sm:$0xff] }
  0x26   :  { %367 = vmatpush.msrb.mxu3 %v156_v30  ;;  %175 = vmatpush.msra.mxu1 %v146_v43  ;;  %v253_v30 = vld [vmem:[%s712_s5 + $0x48] sm:$0xff] }
  0x28   :  { %368 = vmatpush.msrb.mxu3 %v155_v31  ;;  %176 = vmatpush.msra.mxu1 %v145_v45 }
  0x29   :  { %81 = vmatmul.f32.gmra.mxu0 %v27_v17  ;;  %117 = vmatmul.f32.gmra.mxu3 %v39_v21  ;;  %v259_v21 = vld [vmem:[%s712_s5 + $0x78] sm:$0xff] }
  0x2a   :  { %369 = vmatpush.msrb.mxu3 %v154_v33  ;;  %177 = vmatpush.msra.mxu1 %v144_v46  ;;  %v252_v33 = vld [vmem:[%s712_s5 + $0x40] sm:$0xff] }
  0x2b   :  { %264 = vmatpush.msra.mxu2 %v259_v21 }
  0x2c   :  { %370 = vmatpush.msrb.mxu3 %v153_v34  ;;  %178 = vmatpush.msra.mxu1 %v143_v47 }
  0x2e   :  { %371 = vmatpush.msrb.mxu3 %v152_v35  ;;  %v251_v35 = vld [vmem:[%s712_s5 + $0x38] sm:$0xff] }
  0x30   :  { %372 = vmatpush.msrb.mxu3 %v151_v36  ;;  %v250_v36 = vld [vmem:[%s712_s5 + $0x30] sm:$0xff] }
  0x31   :  { %84 = vmatmul.f32.gmra.mxu0 %v28_v18  ;;  %120 = vmatmul.f32.gmra.mxu3 %v40_v23  ;;  %v257_v23 = vld [vmem:[%s712_s5 + $0x68] sm:$0xff] }
  0x32   :  { %373 = vmatpush.msrb.mxu3 %v150_v38 }
  0x34   :  { %374 = vmatpush.msrb.mxu3 %v149_v39 }
  0x36   :  { %375 = vmatpush.msrb.mxu3 %v148_v40  ;;  %v248_v40 = vld [vmem:[%s712_s5 + $0x20] sm:$0xff] }
  0x38   :  { %376 = vmatpush.msrb.mxu3 %v147_v41 }
  0x39   :  { %87 = vmatmul.f32.gmra.mxu0 %v29_v20  ;;  %123 = vmatmul.f32.gmra.mxu3 %v41_v25 }
  0x3a   :  { %377 = vmatpush.msrb.mxu3 %v146_v43 }
  0x3c   :  { %378 = vmatpush.msrb.mxu3 %v145_v45 }
  0x3e   :  { %379 = vmatpush.msrb.mxu3 %v144_v46  ;;  %v246_v46 = vld [vmem:[%s712_s5 + $0x10] sm:$0xff] }
  0x40   :  { %380 = vmatpush.msrb.mxu3 %v143_v47  ;;  %v245_v47 = vld [vmem:[%s712_s5 + $0x8] sm:$0xff] }
  0x41   :  { %90 = vmatmul.f32.gmra.mxu0 %v30_v22  ;;  %v258_v22 = vld [vmem:[%s712_s5 + $0x70] sm:$0xff] }
  0x42   :  { %381 = vmatpush.msra.mxu3 %v259_v21  ;;  %265 = vmatpush.msra.mxu2 %v258_v22 }
  0x44   :  { %382 = vmatpush.msra.mxu3 %v258_v22  ;;  %266 = vmatpush.msra.mxu2 %v257_v23 }
  0x46   :  { %383 = vmatpush.msra.mxu3 %v257_v23 }
  0x49   :  { %93 = vmatmul.f32.gmra.mxu0 %v31_v24 }
  0x51   :  { %96 = vmatmul.f32.gmra.mxu0 %v32_v26  ;;  %v256_v26 = vld [vmem:[%s712_s5 + $0x60] sm:$0xff] }
  0x52   :  { %267 = vmatpush.msra.mxu2 %v256_v26  ;;  %384 = vmatpush.msra.mxu3 %v256_v26 }
  0x54   :  { %268 = vmatpush.msra.mxu2 %v255_v28  ;;  %385 = vmatpush.msra.mxu3 %v255_v28 }
  0x56   :  { %269 = vmatpush.msra.mxu2 %v254_v29  ;;  %386 = vmatpush.msra.mxu3 %v254_v29 }
  0x58   :  { %270 = vmatpush.msra.mxu2 %v253_v30  ;;  %387 = vmatpush.msra.mxu3 %v253_v30 }
  0x59   :  { %99 = vmatmul.f32.gmra.mxu0 %v33_v27 }
  0x5a   :  { %271 = vmatpush.msra.mxu2 %v252_v33  ;;  %388 = vmatpush.msra.mxu3 %v252_v33 }
  0x5c   :  { %272 = vmatpush.msra.mxu2 %v251_v35  ;;  %389 = vmatpush.msra.mxu3 %v251_v35 }
  0x5e   :  { %273 = vmatpush.msra.mxu2 %v250_v36  ;;  %390 = vmatpush.msra.mxu3 %v250_v36 }
  0x61   :  { %102 = vmatmul.f32.gmra.mxu0 %v34_v32 }
  0x69   :  { %105 = vmatmul.f32.gmra.mxu0 %v35_v37  ;;  %v249_v37 = vld [vmem:[%s712_s5 + $0x28] sm:$0xff] }
  0x6a   :  { %274 = vmatpush.msra.mxu2 %v249_v37  ;;  %391 = vmatpush.msra.mxu3 %v249_v37 }
  0x6c   :  { %275 = vmatpush.msra.mxu2 %v248_v40  ;;  %392 = vmatpush.msra.mxu3 %v248_v40 }
  0x71   :  { %108 = vmatmul.f32.gmra.mxu0 %v36_v42  ;;  %v247_v42 = vld [vmem:[%s712_s5 + $0x18] sm:$0xff] }
  0x72   :  { %276 = vmatpush.msra.mxu2 %v247_v42  ;;  %393 = vmatpush.msra.mxu3 %v247_v42 }
  0x74   :  { %277 = vmatpush.msra.mxu2 %v246_v46  ;;  %394 = vmatpush.msra.mxu3 %v246_v46 }
  0x76   :  { %278 = vmatpush.msra.mxu2 %v245_v47  ;;  %395 = vmatpush.msra.mxu3 %v245_v47 }
  0x79   :  { %111 = vmatmul.f32.gmra.mxu0 %v37_v44 }
  0x9e   :  { %v79_v49 = vpop.f32.mrf.mxu0 }
  0x9f   :  { %v80_v50 = vadd.f32 %v587_v48, %v79_v49  ;;  %v244_v49 = vld [vmem:[%s712_s5] sm:$0xff] }
  0xa0   :  { %279 = vmatpush.msra.mxu2 %v244_v49  ;;  %396 = vmatpush.msra.mxu3 %v244_v49 }
  0xa1   :  { %v127_v51 = vmax.f32 %v80_v50, 0.0 }
  0xa3   :  { %179 = vmatmul.f32.vlgmr.msra.gmra.mxu1 %v127_v51 }
  0xa4   :  { %v115_v60 = vpop.f32.mrf.mxu3 }
  0xa5   :  { %v116_v62 = vadd.f32 %v587_v48, %v115_v60 }
  0xa6   :  { %v82_v52 = vpop.f32.mrf.mxu0 }
  0xa7   :  { %v83_v53 = vadd.f32 %v587_v48, %v82_v52  ;;  %v139_v63 = vmax.f32 %v116_v62, 0.0 }
  0xa9   :  { %v128_v54 = vmax.f32 %v83_v53, 0.0  ;;  %215 = vmatmul.f32.vlgmr.msrb.gmra.mxu3 %v139_v63 }
  0xab   :  { %182 = vmatmul.f32.gmra.mxu1 %v128_v54 }
  0xac   :  { %v118_v2 = vpop.f32.mrf.mxu3 }
  0xad   :  { %v119_v4 = vadd.f32 %v587_v48, %v118_v2 }
  0xae   :  { %v85_v55 = vpop.f32.mrf.mxu0 }
  0xaf   :  { %v86_v56 = vadd.f32 %v587_v48, %v85_v55  ;;  %v140_v5 = vmax.f32 %v119_v4, 0.0 }
  0xb1   :  { %v129_v57 = vmax.f32 %v86_v56, 0.0  ;;  %218 = vmatmul.f32.gmra.mxu3 %v140_v5 }
  0xb3   :  { %185 = vmatmul.f32.gmra.mxu1 %v129_v57 }
  0xb4   :  { %v121_v8 = vpop.f32.mrf.mxu3 }
  0xb5   :  { %v122_v10 = vadd.f32 %v587_v48, %v121_v8 }
  0xb6   :  { %v88_v58 = vpop.f32.mrf.mxu0 }
  0xb7   :  { %v89_v59 = vadd.f32 %v587_v48, %v88_v58  ;;  %v141_v11 = vmax.f32 %v122_v10, 0.0 }
  0xb9   :  { %v130_v61 = vmax.f32 %v89_v59, 0.0  ;;  %221 = vmatmul.f32.gmra.mxu3 %v141_v11 }
  0xbb   :  { %188 = vmatmul.f32.gmra.mxu1 %v130_v61 }
  0xbc   :  { %v124_v14 = vpop.f32.mrf.mxu3 }
  0xbd   :  { %v125_v16 = vadd.f32 %v587_v48, %v124_v14 }
  0xbe   :  { %v91_v0 = vpop.f32.mrf.mxu0 }
  0xbf   :  { %v92_v1 = vadd.f32 %v587_v48, %v91_v0  ;;  %v142_v17 = vmax.f32 %v125_v16, 0.0 }
  0xc1   :  { %v131_v3 = vmax.f32 %v92_v1, 0.0  ;;  %224 = vmatmul.f32.gmra.mxu3 %v142_v17 }
  0xc3   :  { %191 = vmatmul.f32.gmra.mxu1 %v131_v3 }
  0xc6   :  { %v94_v6 = vpop.f32.mrf.mxu0 }
  0xc7   :  { %v95_v7 = vadd.f32 %v587_v48, %v94_v6 }
  0xc9   :  { %v132_v9 = vmax.f32 %v95_v7, 0.0 }
  0xcb   :  { %194 = vmatmul.f32.gmra.mxu1 %v132_v9 }
  0xce   :  { %v97_v12 = vpop.f32.mrf.mxu0 }
  0xcf   :  { %v98_v13 = vadd.f32 %v587_v48, %v97_v12 }
  0xd1   :  { %v133_v15 = vmax.f32 %v98_v13, 0.0 }
  0xd3   :  { %197 = vmatmul.f32.gmra.mxu1 %v133_v15 }
  0xd6   :  { %v100_v18 = vpop.f32.mrf.mxu0 }
  0xd7   :  { %v101_v19 = vadd.f32 %v587_v48, %v100_v18 }
  0xd9   :  { %v134_v20 = vmax.f32 %v101_v19, 0.0 }
  0xdb   :  { %200 = vmatmul.f32.gmra.mxu1 %v134_v20 }
  0xde   :  { %v103_v24 = vpop.f32.mrf.mxu0 }
  0xdf   :  { %v104_v25 = vadd.f32 %v587_v48, %v103_v24 }
  0xe1   :  { %v135_v27 = vmax.f32 %v104_v25, 0.0 }
  0xe3   :  { %203 = vmatmul.f32.gmra.mxu1 %v135_v27 }
  0xe6   :  { %v106_v31 = vpop.f32.mrf.mxu0 }
  0xe7   :  { %v107_v32 = vadd.f32 %v587_v48, %v106_v31 }
  0xe9   :  { %v136_v34 = vmax.f32 %v107_v32, 0.0 }
  0xeb   :  { %206 = vmatmul.f32.gmra.mxu1 %v136_v34  ;;  %v399_v34 = vld [vmem:[%s713_s6] ss:$0 sm:$0xff] }
  0xee   :  { %v109_v38 = vpop.f32.mrf.mxu0 }
  0xef   :  { %v110_v39 = vadd.f32 %v587_v48, %v109_v38 }
  0xf1   :  { %v137_v41 = vmax.f32 %v110_v39, 0.0 }
  0xf3   :  { %209 = vmatmul.f32.gmra.mxu1 %v137_v41 }
  0xf6   :  { %v112_v43 = vpop.f32.mrf.mxu0 }
  0xf7   :  { %v113_v44 = vadd.f32 %v587_v48, %v112_v43  ;;  %v398_v48 = vld [vmem:[%s711_s4] ss:$0 sm:$0xff] }
  0xf9   :  { %v138_v45 = vmax.f32 %v113_v44, 0.0 }
  0xfb   :  { %212 = vmatmul.f32.gmra.mxu1 %v138_v45 }
 0x120   :  { %v180_v50 = vpop.f32.mrf.mxu1 }
 0x121   :  { %v181_v51 = vadd.f32 %v398_v48, %v180_v50 }
 0x123   :  { %v228_v52 = vmax.f32 %v181_v51, 0.0 }
 0x125   :  { %280 = vmatmul.f32.vlgmr.msra.gmra.mxu2 %v228_v52 }
 0x128   :  { %v183_v53 = vpop.f32.mrf.mxu1 }
 0x129   :  { %v184_v54 = vadd.f32 %v398_v48, %v183_v53 }
 0x12b   :  { %v229_v55 = vmax.f32 %v184_v54, 0.0 }
 0x12c   :  { %v216_v63 = vpop.f32.mrf.mxu3 }
 0x12d   :  { %283 = vmatmul.f32.gmra.mxu2 %v229_v55  ;;  %v217_v1 = vadd.f32 %v398_v48, %v216_v63 }
 0x12f   :  { %v240_v3 = vmax.f32 %v217_v1, 0.0 }
 0x130   :  { %v186_v56 = vpop.f32.mrf.mxu1 }
 0x131   :  { %v187_v57 = vadd.f32 %v398_v48, %v186_v56  ;;  %316 = vmatmul.f32.vlgmr.msra.gmra.mxu3 %v240_v3 }
 0x133   :  { %v230_v58 = vmax.f32 %v187_v57, 0.0 }
 0x134   :  { %v219_v5 = vpop.f32.mrf.mxu3 }
 0x135   :  { %286 = vmatmul.f32.gmra.mxu2 %v230_v58  ;;  %v220_v7 = vadd.f32 %v398_v48, %v219_v5 }
 0x137   :  { %v241_v9 = vmax.f32 %v220_v7, 0.0 }
 0x138   :  { %v189_v59 = vpop.f32.mrf.mxu1 }
 0x139   :  { %v190_v60 = vadd.f32 %v398_v48, %v189_v59  ;;  %319 = vmatmul.f32.gmra.mxu3 %v241_v9 }
 0x13b   :  { %v231_v61 = vmax.f32 %v190_v60, 0.0 }
 0x13c   :  { %v222_v11 = vpop.f32.mrf.mxu3 }
 0x13d   :  { %289 = vmatmul.f32.gmra.mxu2 %v231_v61  ;;  %v223_v13 = vadd.f32 %v398_v48, %v222_v11 }
 0x13f   :  { %v242_v15 = vmax.f32 %v223_v13, 0.0 }
 0x140   :  { %v192_v62 = vpop.f32.mrf.mxu1 }
 0x141   :  { %v193_v0 = vadd.f32 %v398_v48, %v192_v62  ;;  %322 = vmatmul.f32.gmra.mxu3 %v242_v15 }
 0x143   :  { %v232_v2 = vmax.f32 %v193_v0, 0.0 }
 0x144   :  { %v225_v17 = vpop.f32.mrf.mxu3 }
 0x145   :  { %292 = vmatmul.f32.gmra.mxu2 %v232_v2  ;;  %v226_v19 = vadd.f32 %v398_v48, %v225_v17 }
 0x147   :  { %v243_v21 = vmax.f32 %v226_v19, 0.0 }
 0x148   :  { %v195_v4 = vpop.f32.mrf.mxu1 }
 0x149   :  { %v196_v6 = vadd.f32 %v398_v48, %v195_v4  ;;  %325 = vmatmul.f32.gmra.mxu3 %v243_v21 }
 0x14b   :  { %v233_v8 = vmax.f32 %v196_v6, 0.0 }
 0x14d   :  { %295 = vmatmul.f32.gmra.mxu2 %v233_v8 }
 0x150   :  { %v198_v10 = vpop.f32.mrf.mxu1 }
 0x151   :  { %v199_v12 = vadd.f32 %v398_v48, %v198_v10 }
 0x153   :  { %v234_v14 = vmax.f32 %v199_v12, 0.0 }
 0x155   :  { %298 = vmatmul.f32.gmra.mxu2 %v234_v14 }
 0x158   :  { %v201_v16 = vpop.f32.mrf.mxu1 }
 0x159   :  { %v202_v18 = vadd.f32 %v398_v48, %v201_v16 }
 0x15b   :  { %v235_v20 = vmax.f32 %v202_v18, 0.0 }
 0x15d   :  { %301 = vmatmul.f32.gmra.mxu2 %v235_v20 }
 0x160   :  { %v204_v22 = vpop.f32.mrf.mxu1 }
 0x161   :  { %v205_v23 = vadd.f32 %v398_v48, %v204_v22 }
 0x163   :  { %v236_v24 = vmax.f32 %v205_v23, 0.0 }
 0x165   :  { %304 = vmatmul.f32.gmra.mxu2 %v236_v24 }
 0x168   :  { %v207_v25 = vpop.f32.mrf.mxu1 }
 0x169   :  { %v208_v26 = vadd.f32 %v398_v48, %v207_v25 }
 0x16b   :  { %v237_v27 = vmax.f32 %v208_v26, 0.0 }
 0x16d   :  { %307 = vmatmul.f32.gmra.mxu2 %v237_v27 }
 0x170   :  { %v210_v28 = vpop.f32.mrf.mxu1 }
 0x171   :  { %v211_v29 = vadd.f32 %v398_v48, %v210_v28 }
 0x173   :  { %v238_v30 = vmax.f32 %v211_v29, 0.0 }
 0x175   :  { %310 = vmatmul.f32.gmra.mxu2 %v238_v30 }
 0x178   :  { %v213_v31 = vpop.f32.mrf.mxu1 }
 0x179   :  { %v214_v32 = vadd.f32 %v398_v48, %v213_v31 }
 0x17b   :  { %v239_v33 = vmax.f32 %v214_v32, 0.0 }
 0x17d   :  { %313 = vmatmul.f32.gmra.mxu2 %v239_v33 }
 0x1a8   :  { %v281_v35 = vpop.f32.mrf.mxu2 }
 0x1a9   :  { %v282_v36 = vadd.f32 %v399_v34, %v281_v35 }
 0x1ab   :  { %329 = vst [vmem:[%s714_s7] sm:$0xff] %v282_v36 }
 0x1b0   :  { %v284_v37 = vpop.f32.mrf.mxu2 }
 0x1b1   :  { %v285_v38 = vadd.f32 %v399_v34, %v284_v37 }
 0x1b3   :  { %330 = vst [vmem:[%s714_s7 + $0x8] sm:$0xff] %v285_v38 }
 0x1b4   :  { %v317_v44 = vpop.f32.mrf.mxu3 }
 0x1b5   :  { %v318_v46 = vadd.f32 %v399_v34, %v317_v44 }
 0x1b7   :  { %341 = vst [vmem:[%s714_s7 + $0x60] sm:$0xff] %v318_v46 }
 0x1b8   :  { %v287_v39 = vpop.f32.mrf.mxu2 }
 0x1b9   :  { %v288_v40 = vadd.f32 %v399_v34, %v287_v39 }
 0x1bb   :  { %331 = vst [vmem:[%s714_s7 + $0x10] sm:$0xff] %v288_v40 }
 0x1bc   :  { %v320_v49 = vpop.f32.mrf.mxu3 }
 0x1bd   :  { %v321_v50 = vadd.f32 %v399_v34, %v320_v49 }
 0x1bf   :  { %342 = vst [vmem:[%s714_s7 + $0x68] sm:$0xff] %v321_v50 }
 0x1c0   :  { %v290_v41 = vpop.f32.mrf.mxu2 }
 0x1c1   :  { %v291_v42 = vadd.f32 %v399_v34, %v290_v41 }
 0x1c3   :  { %332 = vst [vmem:[%s714_s7 + $0x18] sm:$0xff] %v291_v42 }
 0x1c4   :  { %v323_v52 = vpop.f32.mrf.mxu3 }
 0x1c5   :  { %v324_v54 = vadd.f32 %v399_v34, %v323_v52 }
 0x1c7   :  { %343 = vst [vmem:[%s714_s7 + $0x70] sm:$0xff] %v324_v54 }
 0x1c8   :  { %v293_v43 = vpop.f32.mrf.mxu2 }
 0x1c9   :  { %v294_v45 = vadd.f32 %v399_v34, %v293_v43 }
 0x1cb   :  { %333 = vst [vmem:[%s714_s7 + $0x20] sm:$0xff] %v294_v45 }
 0x1cc   :  { %v326_v56 = vpop.f32.mrf.mxu3 }
 0x1cd   :  { %v327_v58 = vadd.f32 %v399_v34, %v326_v56 }
 0x1cf   :  { %344 = vst [vmem:[%s714_s7 + $0x78] sm:$0xff] %v327_v58 }
 0x1d0   :  { %v296_v47 = vpop.f32.mrf.mxu2 }
 0x1d1   :  { %v297_v48 = vadd.f32 %v399_v34, %v296_v47 }
 0x1d3   :  { %334 = vst [vmem:[%s714_s7 + $0x28] sm:$0xff] %v297_v48 }
 0x1d8   :  { %v299_v51 = vpop.f32.mrf.mxu2 }
 0x1d9   :  { %v300_v53 = vadd.f32 %v399_v34, %v299_v51 }
 0x1db   :  { %335 = vst [vmem:[%s714_s7 + $0x30] sm:$0xff] %v300_v53 }
 0x1e0   :  { %v302_v55 = vpop.f32.mrf.mxu2 }
 0x1e1   :  { %v303_v57 = vadd.f32 %v399_v34, %v302_v55 }
 0x1e3   :  { %336 = vst [vmem:[%s714_s7 + $0x38] sm:$0xff] %v303_v57 }
 0x1e8   :  { %v305_v59 = vpop.f32.mrf.mxu2 }
 0x1e9   :  { %v306_v60 = vadd.f32 %v399_v34, %v305_v59 }
 0x1eb   :  { %337 = vst [vmem:[%s714_s7 + $0x40] sm:$0xff] %v306_v60 }
 0x1f0   :  { %v308_v61 = vpop.f32.mrf.mxu2 }
 0x1f1   :  { %v309_v62 = vadd.f32 %v399_v34, %v308_v61 }
 0x1f3   :  { %338 = vst [vmem:[%s714_s7 + $0x48] sm:$0xff] %v309_v62 }
 0x1f8   :  { %v311_v63 = vpop.f32.mrf.mxu2 }
 0x1f9   :  { %v312_v0 = vadd.f32 %v399_v34, %v311_v63 }
 0x1fb   :  { %339 = vst [vmem:[%s714_s7 + $0x50] sm:$0xff] %v312_v0 }
 0x200   :  { %v314_v1 = vpop.f32.mrf.mxu2 }
 0x201   :  { %v315_v2 = vadd.f32 %v399_v34, %v314_v1 }
 0x203   :  { %340 = vst [vmem:[%s714_s7 + $0x58] sm:$0xff] %v315_v2 }

</bundles_post_ra>
